<compile_context>
chip_gen: v6e
topology: v6e:2x2x1
jax: 0.10.0
libtpu: 0.0.40
codegen_flags: <defaults>
</compile_context>

<pallas_src>
import jax
import jax.numpy as jnp
from jax.experimental import pallas as pl
from jax.experimental.pallas import tpu as pltpu


def _round_up(v, m):
    return ((v + m - 1) // m) * m


def _mlp_kernel(x_ref, w1_ref, b1_ref, w2_ref, b2_ref, o_ref):
    """Fused Linear -> ReLU -> Linear, whole problem resident in VMEM.

    x_ref : (B, obs)        f32
    w1_ref: (obs, hidden)   f32
    b1_ref: (1, hidden)     f32
    w2_ref: (hidden, Npad)  f32   (output width padded to multiple of 128)
    b2_ref: (1, Npad)       f32
    o_ref : (B, Npad)       f32
    """
    x = x_ref[...]
    w1 = w1_ref[...]
    B = x.shape[0]
    obs = x.shape[1]
    hidden = w1.shape[1]

    # K = obs is tiny (4 for CartPole): do the first contraction as `obs`
    # VPU broadcast-FMAs on (B, hidden) tiles instead of paying MXU push/pop
    # latency for a 4-deep contraction. Static Python unroll at trace time.
    acc = jnp.zeros((B, hidden), jnp.float32)
    for k in range(obs):
        acc = acc + x[:, k:k + 1] * w1[k:k + 1, :]

    h = jnp.maximum(acc + b1_ref[...], 0.0)          # bias + ReLU in f32 on VPU

    # Second layer (K = hidden = 128) on the MXU; lane-dense Npad output means
    # the final store is an unmasked full-lane vst.
    out = jnp.dot(h, w2_ref[...], preferred_element_type=jnp.float32)
    o_ref[...] = (out + b2_ref[...]).astype(o_ref.dtype)


def net_forward(x, w1, b1, w2, b2):
    """Forward pass of Net. x: (B, obs_size) f32 -> (B, n_actions) f32 logits."""
    B, _ = x.shape
    n_actions = w2.shape[1]

    # Lane-dense output: pad n_actions (=2) up to a multiple of 128.
    n_pad = _round_up(n_actions, 128)
    # Sublane-friendly batch: pad B up to a multiple of 8.
    b_pad = _round_up(B, 8)

    if n_pad != n_actions:
        w2 = jnp.pad(w2, ((0, 0), (0, n_pad - n_actions)))
        b2 = jnp.pad(b2, ((0, 0), (0, n_pad - n_actions)))
    if b_pad != B:
        x = jnp.pad(x, ((0, b_pad - B), (0, 0)))

    # Tiny problem: no grid, no pipeline machinery — whole arrays in VMEM.
    # TODO(synk): if this ever feeds large-batch rollouts, add a "parallel"
    # batch grid axis (TB multiple of 8) and cast matmul inputs to bf16.
    out = pl.pallas_call(
        _mlp_kernel,
        out_shape=jax.ShapeDtypeStruct((b_pad, n_pad), jnp.float32),
        in_specs=[pl.BlockSpec(memory_space=pltpu.MemorySpace.VMEM)] * 5,
        out_specs=pl.BlockSpec(memory_space=pltpu.MemorySpace.VMEM),
    )(x, w1, b1, w2, b2)

    return out[:B, :n_actions]


def init_params(key, obs_size, hidden_size, n_actions):
    """Deterministic init mimicking PyTorch nn.Linear default (U(-1/sqrt(fan_in), +))."""
    k1, k2, k3, k4 = jax.random.split(key, 4)
    bound1 = 1.0 / jnp.sqrt(obs_size)
    bound2 = 1.0 / jnp.sqrt(hidden_size)
    w1 = jax.random.uniform(k1, (obs_size, hidden_size), jnp.float32, -bound1, bound1)
    b1 = jax.random.uniform(k2, (1, hidden_size), jnp.float32, -bound1, bound1)
    w2 = jax.random.uniform(k3, (hidden_size, n_actions), jnp.float32, -bound2, bound2)
    b2 = jax.random.uniform(k4, (1, n_actions), jnp.float32, -bound2, bound2)
    return w1, b1, w2, b2


if __name__ == "__main__":
    # CartPole-like sizes: obs_size=4, hidden=128, n_actions=2, batch=16.
    obs_size, hidden_size, n_actions, batch = 4, 128, 2, 16

    key = jax.random.PRNGKey(0)
    kx, kp = jax.random.split(key)
    x = jax.random.normal(kx, (batch, obs_size), dtype=jnp.float32)
    w1, b1, w2, b2 = init_params(kp, obs_size, hidden_size, n_actions)

    out = jax.block_until_ready(net_forward(x, w1, b1, w2, b2))

    # Pure-JAX reference check of the same forward semantics.
    ref = jnp.maximum(x @ w1 + b1, 0.0) @ w2 + b2
    assert out.shape == (batch, n_actions)
    assert jnp.allclose(out, ref, atol=1e-5, rtol=1e-5)

    print("KERNEL_OK")
</pallas_src>

<mosaic_0001>
module attributes {stable_mosaic.version = 11 : i64} {
  func.func @_mlp_kernel(%arg0: memref<16x4xf32, #tpu.memory_space<vmem>>, %arg1: memref<4x128xf32, #tpu.memory_space<vmem>>, %arg2: memref<1x128xf32, #tpu.memory_space<vmem>>, %arg3: memref<128x128xf32, #tpu.memory_space<vmem>>, %arg4: memref<1x128xf32, #tpu.memory_space<vmem>>, %arg5: memref<16x128xf32, #tpu.memory_space<vmem>>) attributes {dimension_semantics = [], scalar_prefetch = 0 : i64, scratch_operands = 0 : i64, tpu.core_type = #tpu.core_type<tc>} {
    %c0 = arith.constant 0 : index
    %c0_0 = arith.constant 0 : index
    %0 = vector.load %arg0[%c0, %c0_0] : memref<16x4xf32, #tpu.memory_space<vmem>>, vector<16x4xf32>
    %c0_1 = arith.constant 0 : index
    %c0_2 = arith.constant 0 : index
    %1 = vector.load %arg1[%c0_1, %c0_2] : memref<4x128xf32, #tpu.memory_space<vmem>>, vector<4x128xf32>
    %cst = arith.constant 0.000000e+00 : f32
    %2 = vector.broadcast %cst : f32 to vector<16x128xf32>
    %3 = vector.extract_strided_slice %0 {offsets = [0, 0], sizes = [16, 1], strides = [1, 1]} : vector<16x4xf32> to vector<16x1xf32>
    %4 = vector.extract_strided_slice %1 {offsets = [0, 0], sizes = [1, 128], strides = [1, 1]} : vector<4x128xf32> to vector<1x128xf32>
    %5 = vector.broadcast %3 : vector<16x1xf32> to vector<16x128xf32>
    %6 = vector.broadcast %4 : vector<1x128xf32> to vector<16x128xf32>
    %7 = arith.mulf %5, %6 : vector<16x128xf32>
    %8 = arith.addf %2, %7 : vector<16x128xf32>
    %9 = vector.extract_strided_slice %0 {offsets = [0, 1], sizes = [16, 1], strides = [1, 1]} : vector<16x4xf32> to vector<16x1xf32>
    %10 = vector.extract_strided_slice %1 {offsets = [1, 0], sizes = [1, 128], strides = [1, 1]} : vector<4x128xf32> to vector<1x128xf32>
    %11 = vector.broadcast %9 : vector<16x1xf32> to vector<16x128xf32>
    %12 = vector.broadcast %10 : vector<1x128xf32> to vector<16x128xf32>
    %13 = arith.mulf %11, %12 : vector<16x128xf32>
    %14 = arith.addf %8, %13 : vector<16x128xf32>
    %15 = vector.extract_strided_slice %0 {offsets = [0, 2], sizes = [16, 1], strides = [1, 1]} : vector<16x4xf32> to vector<16x1xf32>
    %16 = vector.extract_strided_slice %1 {offsets = [2, 0], sizes = [1, 128], strides = [1, 1]} : vector<4x128xf32> to vector<1x128xf32>
    %17 = vector.broadcast %15 : vector<16x1xf32> to vector<16x128xf32>
    %18 = vector.broadcast %16 : vector<1x128xf32> to vector<16x128xf32>
    %19 = arith.mulf %17, %18 : vector<16x128xf32>
    %20 = arith.addf %14, %19 : vector<16x128xf32>
    %21 = vector.extract_strided_slice %0 {offsets = [0, 3], sizes = [16, 1], strides = [1, 1]} : vector<16x4xf32> to vector<16x1xf32>
    %22 = vector.extract_strided_slice %1 {offsets = [3, 0], sizes = [1, 128], strides = [1, 1]} : vector<4x128xf32> to vector<1x128xf32>
    %23 = vector.broadcast %21 : vector<16x1xf32> to vector<16x128xf32>
    %24 = vector.broadcast %22 : vector<1x128xf32> to vector<16x128xf32>
    %25 = arith.mulf %23, %24 : vector<16x128xf32>
    %26 = arith.addf %20, %25 : vector<16x128xf32>
    %c0_3 = arith.constant 0 : index
    %c0_4 = arith.constant 0 : index
    %27 = vector.load %arg2[%c0_3, %c0_4] : memref<1x128xf32, #tpu.memory_space<vmem>>, vector<1x128xf32>
    %28 = vector.broadcast %27 : vector<1x128xf32> to vector<16x128xf32>
    %29 = arith.addf %26, %28 : vector<16x128xf32>
    %cst_5 = arith.constant 0.000000e+00 : f32
    %30 = vector.broadcast %cst_5 : f32 to vector<16x128xf32>
    %31 = arith.maximumf %29, %30 : vector<16x128xf32>
    %c0_6 = arith.constant 0 : index
    %c0_7 = arith.constant 0 : index
    %32 = vector.load %arg3[%c0_6, %c0_7] : memref<128x128xf32, #tpu.memory_space<vmem>>, vector<128x128xf32>
    %cst_8 = arith.constant dense<0.000000e+00> : vector<16x128xf32>
    %33 = tpu.matmul %31, %32, %cst_8 {dimension_numbers = #tpu.dot_dimension_numbers<[1], [0], [0], [1], [0, 0, 1, 1], [], []>} : vector<16x128xf32>, vector<128x128xf32>, vector<16x128xf32> -> vector<16x128xf32>
    %c0_9 = arith.constant 0 : index
    %c0_10 = arith.constant 0 : index
    %34 = vector.load %arg4[%c0_9, %c0_10] : memref<1x128xf32, #tpu.memory_space<vmem>>, vector<1x128xf32>
    %35 = vector.broadcast %34 : vector<1x128xf32> to vector<16x128xf32>
    %36 = arith.addf %33, %35 : vector<16x128xf32>
    %c0_11 = arith.constant 0 : index
    %c0_12 = arith.constant 0 : index
    %37 = vector.load %arg5[%c0_11, %c0_12] : memref<16x128xf32, #tpu.memory_space<vmem>>, vector<16x128xf32>
    tpu.vector_store %arg5[%c0_11, %c0_12], %36 {strides = array<i32>} : memref<16x128xf32, #tpu.memory_space<vmem>>, vector<16x128xf32>,
    return
  }
}

</mosaic_0001>

<bundles_post_ra>
// kernel: tpu_custom_call.1
= control target key start
LH: loop header
LB: loop body
LE: loop exit
PB: predicated region body
PF: predicated region fallthrough
CT: control target
= control target key end

     0   :  { %10 = vsyncpa [#allocation3], 0  ;;  %s412_s0 = inlined_call_operand.vmem [shape: f32[16,4], index: 0, kind: input, shape index: {}]   ;;  %s413_s1 = inlined_call_operand.vmem [shape: f32[4,128], index: 1, kind: input, shape index: {}]   ;;  %s414_s2 = inlined_call_operand.vmem [shape: f32[1,128], index: 2, kind: input, shape index: {}]   ;;  %s415_s3 = inlined_call_operand.hbm [shape: f32[128,128], index: 3, kind: input, shape index: {}]   ;;  %s416_s4 = inlined_call_operand.vmem [shape: f32[1,128], index: 4, kind: input, shape index: {}]   ;;  %s417_s5 = inlined_call_operand.hbm [shape: f32[16,128], index: 5, kind: output, shape index: {}]  }
   0x1   :  { %11 = vsyncpa [#allocation4], 0  ;;  %s347_s18 = smov [#allocation2]  }
   0x2   :  { %s23_s19 = sshll.u32 %s347_s18, 4  ;;  %s24_s19 = int_to_ptr.vmem [resolvable:$true] %s23_s19 }
   0x3   :  { %s311_s20 = scalar_lea.vmem %s24_s19, 2048  ;;  %p316_p1 = scmp.lt.s32.totalorder %s24_s19, %s24_s19 }
   0x4   :  { %p312_p0 = scmp.ne.s32.totalorder %s24_s19, %s311_s20  ;;  %p317_p2 = scmp.lt.s32.totalorder %s311_s20, %s311_s20 }
   0x6   :  { %p318_p3 = por %p317_p2, %p316_p1 }
   0x8   :  { %p319_p4 = pnand %p318_p3, %p312_p0 }
   0xa   :  { %322 = shalt.err (!%p319_p4)
}
   0xb   :  { %s348_s21 = smov 128   ;;  %s349_s22 = smov 8  }
   0xc   :  { %29 = dma.hbm_to_vmem [thread:$0]  %s415_s3, 2048, %s24_s19, [#allocation3], %s348_s21, %s348_s21, %s349_s22  }
   0xd   :  { %343 = dma.done.wait [#allocation3], 2048  }
   0xe   :  { %344 = vsyncadd [#allocation3], 4294965248  ;;  %v350_v0 = vmov 0   ;;  %v36_v1 = vld [vmem:[%s412_s0 + $0x8] sm:$0xff]  ;;  %v35_v2 = vld [vmem:[%s412_s0] sm:$0xff]  ;;  %v351_v5 = vmov 1   ;;  %v48_v22 = vlaneseq }
   0xf   :  { %297 = vset.pattern.permute.xlu1 %v350_v0  ;;  %295 = vset.pattern.permute.xlu0 %v350_v0  ;;  %v130_v3 = vld [vmem:[#allocation2 + $0x78] sm:$0xff]  ;;  %v129_v4 = vld [vmem:[#allocation2 + $0x70] sm:$0xff]  ;;  %v128_v6 = vld [vmem:[#allocation2 + $0x68] sm:$0xff]  ;;  %v352_v8 = vmov 2   ;;  %v353_v11 = vmov 3   ;;  %s354_s7 = smov [#allocation5]  }
  0x10   :  { %45 = vperm.xlu1 %297, %v36_v1   ;;  %40 = vperm.xlu0 %295, %v35_v2   ;;  %v127_v7 = vld [vmem:[#allocation2 + $0x60] sm:$0xff]  ;;  %v126_v9 = vld [vmem:[#allocation2 + $0x58] sm:$0xff]  ;;  %v125_v10 = vld [vmem:[#allocation2 + $0x50] sm:$0xff]  ;;  %v49_v23 = vshrl.u32 %v48_v22, 7  ;;  %s220_s8 = sshll.u32 %s354_s7, 4  ;;  %s221_s8 = int_to_ptr.vmem [resolvable:$true] %s220_s8 }
  0x11   :  { %252 = vmatprep.subr.mxu0 %v130_v3  ;;  %v124_v12 = vld [vmem:[#allocation2 + $0x48] sm:$0xff]  ;;  %v123_v13 = vld [vmem:[#allocation2 + $0x40] sm:$0xff]  ;;  %v122_v14 = vld [vmem:[#allocation2 + $0x38] sm:$0xff]  ;;  %p328_p6 = scmp.lt.s32.totalorder %s221_s8, %s221_s8 }
  0x12   :  { %253 = vmatpush3.msra.mxu0 %v130_v3  ;;  %v121_v15 = vld [vmem:[#allocation2 + $0x30] sm:$0xff]  ;;  %v120_v16 = vld [vmem:[#allocation2 + $0x28] sm:$0xff]  ;;  %v119_v17 = vld [vmem:[#allocation2 + $0x20] sm:$0xff]  ;;  %v50_v26 = vsub.s32 0, %v49_v23  ;;  %v66_v27 = vsub.s32 1, %v49_v23  ;;  %v82_v29 = vsub.s32 2, %v49_v23 }
  0x13   :  { %254 = vmatprep.subr.mxu0 %v129_v4  ;;  %v118_v18 = vld [vmem:[#allocation2 + $0x18] sm:$0xff]  ;;  %v117_v19 = vld [vmem:[#allocation2 + $0x10] sm:$0xff]  ;;  %v116_v20 = vld [vmem:[#allocation2 + $0x8] sm:$0xff]  ;;  %v98_v37 = vsub.s32 3, %v49_v23 }
  0x14   :  { %298 = vset.pattern.permute.xlu1 %v351_v5  ;;  %296 = vset.pattern.permute.xlu0 %v351_v5  ;;  %v115_v21 = vld [vmem:[#allocation2] sm:$0xff] }
  0x15   :  { %61 = vperm.xlu1 %298, %v36_v1   ;;  %57 = vperm.xlu0 %296, %v35_v2   ;;  %v37_v28 = vld [vmem:[%s413_s1] sm:$0xf] }
  0x16   :  { %255 = vmatpush3.msra.mxu0 %v129_v4  ;;  %v51_v32 = vrot.slane %v37_v28, %v50_v26  ;;  %v67_v33 = vrot.slane %v37_v28, %v66_v27  ;;  %v83_v36 = vrot.slane %v37_v28, %v82_v29  ;;  %v99_v41 = vrot.slane %v37_v28, %v98_v37  ;;  %v232_v49 = vld [vmem:[%s414_s2] ss:$0 sm:$0xff]  ;;  %s323_s2 = scalar_lea.vmem %s221_s8, 256 }
  0x17   :  { %256 = vmatprep.subr.mxu0 %v128_v6  ;;  %v233_v60 = vld [vmem:[%s416_s4] ss:$0 sm:$0xff]  ;;  %p324_p5 = scmp.ne.s32.totalorder %s221_s8, %s323_s2  ;;  %p329_p7 = scmp.lt.s32.totalorder %s323_s2, %s323_s2 }
  0x18   :  { %257 = vmatpush3.msra.mxu0 %v128_v6 }
  0x19   :  { %299 = vset.pattern.permute.xlu1 %v352_v8  ;;  %300 = vset.pattern.permute.xlu0 %v352_v8  ;;  %p330_p8 = por %p329_p7, %p328_p6 }
  0x1a   :  { %73 = vperm.xlu1 %299, %v35_v2   ;;  %77 = vperm.xlu0 %300, %v36_v1  }
  0x1b   :  { %258 = vmatprep.subr.mxu0 %v127_v7  ;;  %p331_p9 = pnand %p330_p8, %p324_p5 }
  0x1c   :  { %259 = vmatpush3.msra.mxu0 %v127_v7 }
  0x1d   :  { %260 = vmatprep.subr.mxu0 %v126_v9 }
  0x1e   :  { %301 = vset.pattern.permute.xlu1 %v353_v11  ;;  %261 = vmatpush3.msra.mxu0 %v126_v9 }
  0x1f   :  { %89 = vperm.xlu1 %301, %v35_v2   ;;  %262 = vmatprep.subr.mxu0 %v125_v10 }
  0x20   :  { %263 = vmatpush3.msra.mxu0 %v125_v10  ;;  %302 = vset.pattern.permute.xlu0 %v353_v11 }
  0x21   :  { %264 = vmatprep.subr.mxu0 %v124_v12 }
  0x22   :  { %265 = vmatpush3.msra.mxu0 %v124_v12 }
  0x23   :  { %93 = vperm.xlu1 %301, %v36_v1   ;;  %266 = vmatprep.subr.mxu0 %v123_v13 }
  0x24   :  { %267 = vmatpush3.msra.mxu0 %v123_v13 }
  0x25   :  { %268 = vmatprep.subr.mxu0 %v122_v14 }
  0x26   :  { %269 = vmatpush3.msra.mxu0 %v122_v14 }
  0x27   :  { %270 = vmatprep.subr.mxu0 %v121_v15 }
  0x28   :  { %271 = vmatpush3.msra.mxu0 %v121_v15 }
  0x29   :  { %272 = vmatprep.subr.mxu0 %v120_v16 }
  0x2a   :  { %273 = vmatpush3.msra.mxu0 %v120_v16 }
  0x2b   :  { %274 = vmatprep.subr.mxu0 %v119_v17 }
  0x2c   :  { %275 = vmatpush3.msra.mxu0 %v119_v17 }
  0x2d   :  { %276 = vmatprep.subr.mxu0 %v118_v18 }
  0x2e   :  { %277 = vmatpush3.msra.mxu0 %v118_v18 }
  0x2f   :  { %278 = vmatprep.subr.mxu0 %v117_v19 }
  0x30   :  { %279 = vmatpush3.msra.mxu0 %v117_v19 }
  0x31   :  { %280 = vmatprep.subr.mxu0 %v116_v20 }
  0x32   :  { %281 = vmatpush3.msra.mxu0 %v116_v20 }
  0x33   :  { %282 = vmatprep.subr.mxu0 %v115_v21 }
  0x34   :  { %283 = vmatpush3.msra.mxu0 %v115_v21 }
  0x8b   :  { %v46_v24 = vpop.permute.xlu1 %45  ;;  %v41_v25 = vpop.permute.xlu0 %40 }
  0x8c   :  { %v52_v34 = vmul.f32 %v51_v32, %v41_v25  ;;  %v53_v45 = vmul.f32 %v51_v32, %v46_v24 }
  0x90   :  { %v62_v30 = vpop.permute.xlu1 %61  ;;  %v58_v31 = vpop.permute.xlu0 %57 }
  0x91   :  { %v68_v35 = vmul.f32 %v67_v33, %v58_v31  ;;  %v69_v43 = vmul.f32 %v67_v33, %v62_v30 }
  0x93   :  { %v70_v39 = vadd.f32 %v68_v35, %v52_v34  ;;  %v71_v50 = vadd.f32 %v69_v43, %v53_v45 }
  0x95   :  { %v74_v38 = vpop.permute.xlu1 %73  ;;  %v78_v42 = vpop.permute.xlu0 %77 }
  0x96   :  { %v84_v40 = vmul.f32 %v83_v36, %v74_v38  ;;  %v85_v47 = vmul.f32 %v83_v36, %v78_v42 }
  0x98   :  { %v86_v46 = vadd.f32 %v84_v40, %v70_v39  ;;  %v87_v53 = vadd.f32 %v85_v47, %v71_v50 }
  0x9a   :  { %v90_v44 = vpop.permute.xlu1 %89 }
  0x9b   :  { %v100_v48 = vmul.f32 %v99_v41, %v90_v44 }
  0x9d   :  { %v102_v51 = vadd.f32 %v100_v48, %v86_v46 }
  0x9e   :  { %v94_v52 = vpop.permute.xlu1 %93 }
  0x9f   :  { %v101_v54 = vmul.f32 %v99_v41, %v94_v52  ;;  %v111_v55 = vadd.f32 %v232_v49, %v102_v51 }
  0xa1   :  { %v103_v56 = vadd.f32 %v101_v54, %v87_v53  ;;  %v113_v57 = vmax.f32 %v111_v55, 0.0 }
  0xa3   :  { %v112_v58 = vadd.f32 %v232_v49, %v103_v56  ;;  %284 = vmatprep.mubr.f32.mxu0 %v113_v57 }
  0xa5   :  { %v114_v59 = vmax.f32 %v112_v58, 0.0 }
  0xa7   :  { %285 = vmatmul.mubr.f32.vlgmr.msra.gmra.mxu0 %v114_v59 }
 0x167   :  { %v286_v61 = vpop.f32.mrf.mxu0 }
 0x168   :  { %v210_v62 = vadd.f32 %v286_v61, %v233_v60 }
 0x169   :  { %v204_v63 = vpop.f32.mrf.mxu0 }
 0x16a   :  { %214 = vst [vmem:[#allocation5 + $0x8] sm:$0xff] %v210_v62  ;;  %v205_v0 = vadd.f32 %v233_v60, %v204_v63 }
 0x16c   :  { %213 = vst [vmem:[#allocation5] sm:$0xff] %v205_v0 }
 0x16d   :  { %334 = shalt.err (!%p331_p9)
}
 0x16e   :  { %226 = dma.vmem_to_hbm [thread:$0]  %s221_s8, 256, %s417_s5, [#allocation4], %s348_s21, %s348_s21, %s349_s22  }
 0x16f   :  { %345 = dma.done.wait [#allocation4], 256  }
 0x170   :  { %346 = vsyncadd [#allocation4], 4294967040 }
 0x171   :  { %230 = vsyncpa [#allocation3], 1 }
 0x172   :  { %231 = vsyncpa [#allocation4], 1 }

</bundles_post_ra>
